<compile_context>
chip_gen: v7x
topology: tpu7x:2x2x1
jax: 0.10.0
libtpu: 0.0.40
codegen_flags: <defaults>
</compile_context>

<pallas_src>
import functools

import jax
import jax.numpy as jnp
from jax import lax
from jax.experimental import pallas as pl
from jax.experimental.pallas import tpu as pltpu

LN_EPS = 1e-5
_VMEM_LIMIT = 48 * 1024 * 1024  # fits v7x (64 MiB VMEM); raises v5e/v6e defaults


def _layernorm_rows_f32(x, gamma, beta):
    """Torch-style LayerNorm over the last axis: f32 math, biased variance."""
    xf = x.astype(jnp.float32)
    mean = jnp.mean(xf, axis=-1, keepdims=True)
    centered = xf - mean
    var = jnp.mean(centered * centered, axis=-1, keepdims=True)
    inv = lax.rsqrt(var + LN_EPS)
    return centered * inv * gamma.astype(jnp.float32) + beta.astype(jnp.float32)


# ----------------------------------------------------------------------------
# Fused PreNorm(Linear): LayerNorm -> matmul -> +bias in one pallas_call.
# ----------------------------------------------------------------------------
def _prenorm_linear_kernel(x_ref, g_ref, b_ref, w_ref, bias_ref, o_ref,
                           xn_ref, acc_ref, *, nk, tk):
    # x_ref: (tm, D) full-row tile, resident across the j (N) and k (K) axes.
    # w_ref: (tk, tn); bias_ref: (1, tn); o_ref: (tm, tn).
    # xn_ref: VMEM (nk, tm, tk) normalized rows in the input dtype (MXU-native).
    # acc_ref: VMEM (tm, tn) f32 accumulator.
    j = pl.program_id(1)
    k = pl.program_id(2)

    # Normalize the row tile exactly once per M-tile (gamma/beta casts happen
    # only here, so they are not re-emitted per N/K step).
    @pl.when(jnp.logical_and(j == 0, k == 0))
    def _():
        y = _layernorm_rows_f32(x_ref[...], g_ref[...], b_ref[...])
        for kk in range(nk):  # static unroll: static lane slices of the value
            xn_ref[kk] = y[:, kk * tk:(kk + 1) * tk].astype(xn_ref.dtype)

    @pl.when(k == 0)
    def _():
        acc_ref[...] = jnp.zeros_like(acc_ref)

    # Feed the MXU in the native input dtype; accumulate in f32.
    acc_ref[...] += jnp.dot(xn_ref[k], w_ref[...],
                            preferred_element_type=jnp.float32)

    @pl.when(k == nk - 1)
    def _():
        o_ref[...] = (acc_ref[...] + bias_ref[...].astype(jnp.float32)
                      ).astype(o_ref.dtype)


def pre_norm_linear(x, gamma, beta, w, bias, *, tm=256, tn=256, tk=512):
    """out = Linear(LayerNorm(x)) fused in a single Pallas kernel."""
    B, S, D = x.shape
    Dout = w.shape[1]
    M = B * S
    tm, tn, tk = min(tm, M), min(tn, Dout), min(tk, D)
    # TODO(synk): pad ragged shapes to tile multiples instead of asserting.
    assert M % tm == 0 and Dout % tn == 0 and D % tk == 0
    nm, nj, nk = M // tm, Dout // tn, D // tk

    x2 = x.reshape(M, D)
    g2 = gamma.reshape(1, D)
    b2 = beta.reshape(1, D)
    bias2 = bias.reshape(1, Dout)

    kernel = functools.partial(_prenorm_linear_kernel, nk=nk, tk=tk)

    y = pl.pallas_call(
        kernel,
        out_shape=jax.ShapeDtypeStruct((M, Dout), x.dtype),
        grid=(nm, nj, nk),
        in_specs=[
            pl.BlockSpec((tm, D), lambda i, j, k: (i, 0)),   # x rows (resident)
            pl.BlockSpec((1, D), lambda i, j, k: (0, 0)),    # gamma
            pl.BlockSpec((1, D), lambda i, j, k: (0, 0)),    # beta
            pl.BlockSpec((tk, tn), lambda i, j, k: (k, j)),  # weight tile
            pl.BlockSpec((1, tn), lambda i, j, k: (0, j)),   # bias tile
        ],
        out_specs=pl.BlockSpec((tm, tn), lambda i, j, k: (i, j)),
        scratch_shapes=[
            pltpu.VMEM((nk, tm, tk), x.dtype),   # normalized rows, K-tiled
            pltpu.VMEM((tm, tn), jnp.float32),   # f32 accumulator
        ],
        compiler_params=pltpu.CompilerParams(
            # M axis parallel (megacore). j/k must be "arbitrary": the scratch
            # written at (j==0, k==0) is consumed by later j/k iterations.
            dimension_semantics=("parallel", "arbitrary", "arbitrary"),
            vmem_limit_bytes=_VMEM_LIMIT,
        ),
    )(x2, g2, b2, w, bias2)
    return y.reshape(B, S, Dout)


# ----------------------------------------------------------------------------
# Standalone row-tiled LayerNorm (for PreNorm with an arbitrary `fn`).
# ----------------------------------------------------------------------------
def _layernorm_kernel(x_ref, g_ref, b_ref, o_ref):
    o_ref[...] = _layernorm_rows_f32(
        x_ref[...], g_ref[...], b_ref[...]).astype(o_ref.dtype)


def layernorm_pallas(x, gamma, beta, *, rows_per_block=512):
    orig_shape = x.shape
    D = orig_shape[-1]
    M = x.size // D
    x2 = x.reshape(M, D)
    tm = min(rows_per_block, M)
    assert M % tm == 0  # TODO(synk): pad ragged row counts instead of asserting.
    out = pl.pallas_call(
        _layernorm_kernel,
        out_shape=jax.ShapeDtypeStruct((M, D), x.dtype),
        grid=(M // tm,),
        in_specs=[
            pl.BlockSpec((tm, D), lambda i: (i, 0)),
            pl.BlockSpec((1, D), lambda i: (0, 0)),
            pl.BlockSpec((1, D), lambda i: (0, 0)),
        ],
        out_specs=pl.BlockSpec((tm, D), lambda i: (i, 0)),
        compiler_params=pltpu.CompilerParams(
            dimension_semantics=("parallel",),
            vmem_limit_bytes=_VMEM_LIMIT,
        ),
    )(x2, gamma.reshape(1, D), beta.reshape(1, D))
    return out.reshape(orig_shape)


def pre_norm(x, gamma, beta, fn, **kwargs):
    """Generic PreNorm: fn(LayerNorm(x), **kwargs) for an arbitrary fn."""
    return fn(layernorm_pallas(x, gamma, beta), **kwargs)


if __name__ == "__main__":
    B, S, D, Dout = 2, 8, 32, 32
    key = jax.random.PRNGKey(0)
    kx, kg, kb, kw, kbias = jax.random.split(key, 5)

    x = jax.random.normal(kx, (B, S, D), dtype=jnp.float32)
    gamma = 1.0 + 0.1 * jax.random.normal(kg, (D,), dtype=jnp.float32)
    beta = 0.1 * jax.random.normal(kb, (D,), dtype=jnp.float32)
    w = jax.random.normal(kw, (D, Dout), dtype=jnp.float32) / jnp.sqrt(D)
    bias = 0.01 * jax.random.normal(kbias, (Dout,), dtype=jnp.float32)

    # Fused PreNorm + Linear (the hot path).
    out = jax.block_until_ready(pre_norm_linear(x, gamma, beta, w, bias))

    # Generic PreNorm path: Pallas LayerNorm feeding an arbitrary fn.
    fn = lambda y: jnp.einsum("bsd,de->bse", y, w) + bias
    out_generic = jax.block_until_ready(pre_norm(x, gamma, beta, fn))

    # Reference (mirrors torch LayerNorm + Linear).
    mean = jnp.mean(x, axis=-1, keepdims=True)
    var = jnp.mean((x - mean) ** 2, axis=-1, keepdims=True)
    ref_ln = (x - mean) / jnp.sqrt(var + LN_EPS) * gamma + beta
    ref = jnp.einsum("bsd,de->bse", ref_ln, w) + bias

    assert out.shape == (B, S, Dout)
    assert jnp.allclose(out, ref, atol=1e-4, rtol=1e-4)
    assert jnp.allclose(out_generic, ref, atol=1e-4, rtol=1e-4)
    print("KERNEL_OK")
</pallas_src>

<mosaic_0001>
module attributes {stable_mosaic.version = 11 : i64} {
  func.func @_prenorm_linear_kernel(%arg0: i32, %arg1: i32, %arg2: i32, %arg3: memref<16x32xf32, #tpu.memory_space<vmem>>, %arg4: memref<1x32xf32, #tpu.memory_space<vmem>>, %arg5: memref<1x32xf32, #tpu.memory_space<vmem>>, %arg6: memref<32x32xf32, #tpu.memory_space<vmem>>, %arg7: memref<1x32xf32, #tpu.memory_space<vmem>>, %arg8: memref<16x32xf32, #tpu.memory_space<vmem>>, %arg9: memref<1x16x32xf32, #tpu.memory_space<vmem>>, %arg10: memref<16x32xf32, #tpu.memory_space<vmem>>) attributes {dimension_semantics = [#tpu.dimension_semantics<parallel>, #tpu.dimension_semantics<arbitrary>, #tpu.dimension_semantics<arbitrary>], iteration_bounds = array<i64: 1, 1, 1>, scalar_prefetch = 0 : i64, scratch_operands = 2 : i64, tpu.core_type = #tpu.core_type<tc>, window_params = [{transform_indices = @transform_0, window_bounds = array<i64: 16, 32>}, {pipeline_mode = #tpu.pipeline_mode<synchronous>, transform_indices = @transform_1, window_bounds = array<i64: 1, 32>}, {pipeline_mode = #tpu.pipeline_mode<synchronous>, transform_indices = @transform_2, window_bounds = array<i64: 1, 32>}, {transform_indices = @transform_3, window_bounds = array<i64: 32, 32>}, {transform_indices = @transform_4, window_bounds = array<i64: 1, 32>}, {transform_indices = @transform_5, window_bounds = array<i64: 16, 32>}]} {
    %c0_i32 = arith.constant 0 : i32
    %0 = arith.cmpi eq, %arg1, %c0_i32 : i32
    %c0_i32_0 = arith.constant 0 : i32
    %1 = arith.cmpi eq, %arg2, %c0_i32_0 : i32
    %2 = arith.andi %0, %1 : i1
    %3 = arith.extui %2 : i1 to i32
    %c0_i32_1 = arith.constant 0 : i32
    %4 = arith.cmpi ne, %3, %c0_i32_1 : i32
    scf.if %4 {
      %c0_13 = arith.constant 0 : index
      %c0_14 = arith.constant 0 : index
      %19 = vector.load %arg3[%c0_13, %c0_14] : memref<16x32xf32, #tpu.memory_space<vmem>>, vector<16x32xf32>
      %c0_15 = arith.constant 0 : index
      %c0_16 = arith.constant 0 : index
      %20 = vector.load %arg4[%c0_15, %c0_16] : memref<1x32xf32, #tpu.memory_space<vmem>>, vector<1x32xf32>
      %c0_17 = arith.constant 0 : index
      %c0_18 = arith.constant 0 : index
      %21 = vector.load %arg5[%c0_17, %c0_18] : memref<1x32xf32, #tpu.memory_space<vmem>>, vector<1x32xf32>
      %cst_19 = arith.constant dense<0.000000e+00> : vector<16xf32>
      %22 = vector.multi_reduction <add>, %19, %cst_19 [1] : vector<16x32xf32> to vector<16xf32>
      %23 = vector.shape_cast %22 : vector<16xf32> to vector<16x1xf32>
      %cst_20 = arith.constant 3.200000e+01 : f32
      %24 = vector.broadcast %cst_20 : f32 to vector<16x1xf32>
      %25 = arith.divf %23, %24 : vector<16x1xf32>
      %26 = vector.broadcast %25 : vector<16x1xf32> to vector<16x32xf32>
      %27 = arith.subf %19, %26 : vector<16x32xf32>
      %28 = arith.mulf %27, %27 : vector<16x32xf32>
      %cst_21 = arith.constant dense<0.000000e+00> : vector<16xf32>
      %29 = vector.multi_reduction <add>, %28, %cst_21 [1] : vector<16x32xf32> to vector<16xf32>
      %30 = vector.shape_cast %29 : vector<16xf32> to vector<16x1xf32>
      %cst_22 = arith.constant 3.200000e+01 : f32
      %31 = vector.broadcast %cst_22 : f32 to vector<16x1xf32>
      %32 = arith.divf %30, %31 : vector<16x1xf32>
      %cst_23 = arith.constant 9.99999974E-6 : f32
      %33 = vector.broadcast %cst_23 : f32 to vector<16x1xf32>
      %34 = arith.addf %32, %33 : vector<16x1xf32>
      %35 = math.rsqrt %34 : vector<16x1xf32>
      %36 = vector.broadcast %35 : vector<16x1xf32> to vector<16x32xf32>
      %37 = arith.mulf %27, %36 : vector<16x32xf32>
      %38 = vector.broadcast %20 : vector<1x32xf32> to vector<16x32xf32>
      %39 = arith.mulf %37, %38 : vector<16x32xf32>
      %40 = vector.broadcast %21 : vector<1x32xf32> to vector<16x32xf32>
      %41 = arith.addf %39, %40 : vector<16x32xf32>
      %c0_24 = arith.constant 0 : index
      %c0_25 = arith.constant 0 : index
      %c0_26 = arith.constant 0 : index
      %42 = vector.load %arg9[%c0_24, %c0_25, %c0_26] : memref<1x16x32xf32, #tpu.memory_space<vmem>>, vector<1x16x32xf32>
      %43 = vector.shape_cast %42 : vector<1x16x32xf32> to vector<16x32xf32>
      %44 = vector.shape_cast %41 : vector<16x32xf32> to vector<1x16x32xf32>
      tpu.vector_store %arg9[%c0_24, %c0_25, %c0_26], %44 {strides = array<i32>} : memref<1x16x32xf32, #tpu.memory_space<vmem>>, vector<1x16x32xf32>,
    } else {
    }
    %c0_i32_2 = arith.constant 0 : i32
    %5 = arith.cmpi eq, %arg2, %c0_i32_2 : i32
    %6 = arith.extui %5 : i1 to i32
    %c0_i32_3 = arith.constant 0 : i32
    %7 = arith.cmpi ne, %6, %c0_i32_3 : i32
    scf.if %7 {
      %cst_13 = arith.constant 0.000000e+00 : f32
      %19 = vector.broadcast %cst_13 : f32 to vector<16x32xf32>
      %c0_14 = arith.constant 0 : index
      %c0_15 = arith.constant 0 : index
      %20 = vector.load %arg10[%c0_14, %c0_15] : memref<16x32xf32, #tpu.memory_space<vmem>>, vector<16x32xf32>
      tpu.vector_store %arg10[%c0_14, %c0_15], %19 {strides = array<i32>} : memref<16x32xf32, #tpu.memory_space<vmem>>, vector<16x32xf32>,
    } else {
    }
    %c0 = arith.constant 0 : index
    %c0_4 = arith.constant 0 : index
    %8 = vector.load %arg10[%c0, %c0_4] : memref<16x32xf32, #tpu.memory_space<vmem>>, vector<16x32xf32>
    %9 = arith.index_cast %arg2 : i32 to index
    %c0_5 = arith.constant 0 : index
    %c0_6 = arith.constant 0 : index
    %10 = vector.load %arg9[%9, %c0_5, %c0_6] : memref<1x16x32xf32, #tpu.memory_space<vmem>>, vector<1x16x32xf32>
    %11 = vector.shape_cast %10 : vector<1x16x32xf32> to vector<16x32xf32>
    %c0_7 = arith.constant 0 : index
    %c0_8 = arith.constant 0 : index
    %12 = vector.load %arg6[%c0_7, %c0_8] : memref<32x32xf32, #tpu.memory_space<vmem>>, vector<32x32xf32>
    %cst = arith.constant dense<0.000000e+00> : vector<16x32xf32>
    %13 = tpu.matmul %11, %12, %cst {dimension_numbers = #tpu.dot_dimension_numbers<[1], [0], [0], [1], [0, 0, 1, 1], [], []>} : vector<16x32xf32>, vector<32x32xf32>, vector<16x32xf32> -> vector<16x32xf32>
    %14 = arith.addf %8, %13 : vector<16x32xf32>
    %c0_9 = arith.constant 0 : index
    %c0_10 = arith.constant 0 : index
    %15 = vector.load %arg10[%c0_9, %c0_10] : memref<16x32xf32, #tpu.memory_space<vmem>>, vector<16x32xf32>
    tpu.vector_store %arg10[%c0_9, %c0_10], %14 {strides = array<i32>} : memref<16x32xf32, #tpu.memory_space<vmem>>, vector<16x32xf32>,
    %c0_i32_11 = arith.constant 0 : i32
    %16 = arith.cmpi eq, %arg2, %c0_i32_11 : i32
    %17 = arith.extui %16 : i1 to i32
    %c0_i32_12 = arith.constant 0 : i32
    %18 = arith.cmpi ne, %17, %c0_i32_12 : i32
    scf.if %18 {
      %c0_13 = arith.constant 0 : index
      %c0_14 = arith.constant 0 : index
      %19 = vector.load %arg10[%c0_13, %c0_14] : memref<16x32xf32, #tpu.memory_space<vmem>>, vector<16x32xf32>
      %c0_15 = arith.constant 0 : index
      %c0_16 = arith.constant 0 : index
      %20 = vector.load %arg7[%c0_15, %c0_16] : memref<1x32xf32, #tpu.memory_space<vmem>>, vector<1x32xf32>
      %21 = vector.broadcast %20 : vector<1x32xf32> to vector<16x32xf32>
      %22 = arith.addf %19, %21 : vector<16x32xf32>
      %c0_17 = arith.constant 0 : index
      %c0_18 = arith.constant 0 : index
      %23 = vector.load %arg8[%c0_17, %c0_18] : memref<16x32xf32, #tpu.memory_space<vmem>>, vector<16x32xf32>
      tpu.vector_store %arg8[%c0_17, %c0_18], %22 {strides = array<i32>} : memref<16x32xf32, #tpu.memory_space<vmem>>, vector<16x32xf32>,
    } else {
    }
    return
  }
  func.func @transform_0(%arg0: i32, %arg1: i32, %arg2: i32) -> (i32, i32) {
    %c0_i32 = arith.constant 0 : i32
    %c0_i32_0 = arith.constant 0 : i32
    return %arg0, %c0_i32 : i32, i32
  }
  func.func @transform_1(%arg0: i32, %arg1: i32, %arg2: i32) -> (i32, i32) {
    %c0_i32 = arith.constant 0 : i32
    %c0_i32_0 = arith.constant 0 : i32
    %c0_i32_1 = arith.constant 0 : i32
    return %c0_i32, %c0_i32_0 : i32, i32
  }
  func.func @transform_2(%arg0: i32, %arg1: i32, %arg2: i32) -> (i32, i32) {
    %c0_i32 = arith.constant 0 : i32
    %c0_i32_0 = arith.constant 0 : i32
    %c0_i32_1 = arith.constant 0 : i32
    return %c0_i32, %c0_i32_0 : i32, i32
  }
  func.func @transform_3(%arg0: i32, %arg1: i32, %arg2: i32) -> (i32, i32) {
    %c0_i32 = arith.constant 0 : i32
    return %arg2, %arg1 : i32, i32
  }
  func.func @transform_4(%arg0: i32, %arg1: i32, %arg2: i32) -> (i32, i32) {
    %c0_i32 = arith.constant 0 : i32
    %c0_i32_0 = arith.constant 0 : i32
    return %c0_i32, %arg1 : i32, i32
  }
  func.func @transform_5(%arg0: i32, %arg1: i32, %arg2: i32) -> (i32, i32) {
    %c0_i32 = arith.constant 0 : i32
    return %arg0, %arg1 : i32, i32
  }
}

</mosaic_0001>

<bundles_post_ra>
// kernel: tpu_custom_call.1
= control target key start
LH: loop header
LB: loop body
LE: loop exit
PB: predicated region body
PF: predicated region fallthrough
CT: control target
= control target key end

     0   :  { %10 = vsyncpa [#allocation5], 0  ;;  %s457_s0 = inlined_call_operand.hbm [shape: f32[16,32], index: 0, kind: input, shape index: {}]   ;;  %s458_s1 = inlined_call_operand.vmem [shape: f32[1,32], index: 1, kind: input, shape index: {}]   ;;  %s459_s2 = inlined_call_operand.vmem [shape: f32[1,32], index: 2, kind: input, shape index: {}]   ;;  %s460_s3 = inlined_call_operand.hbm [shape: f32[32,32], index: 3, kind: input, shape index: {}]   ;;  %s461_s4 = inlined_call_operand.vmem [shape: f32[1,32], index: 4, kind: input, shape index: {}]   ;;  %s462_s5 = inlined_call_operand.hbm [shape: f32[16,32], index: 5, kind: output, shape index: {}]  }
   0x1   :  { %11 = vsyncpa [#allocation8], 0 }
   0x2   :  { %12 = vsyncpa [#allocation6], 0  ;;  %s353_s18 = smov [#allocation4]   ;;  %s281_s22 = scalar_lea.hbm %s457_s0, 256 }
   0x3   :  { %s18_s19 = sshll.u32 %s353_s18, 4  ;;  %p282_p0 = scmp.ne.s32.totalorder %s457_s0, %s281_s22  ;;  %s19_s19 = int_to_ptr.vmem [resolvable:$true] %s18_s19 }
   0x4   :  { %p285_p1 = scmp.lt.u32.totalorder %s281_s22, %s457_s0 }
   0x6   :  { %p287_p2 = pnand %p285_p1, %p282_p0 }
   0x8   :  { %290 = shalt.err (!%p287_p2)
}
   0x9   :  { %s291_s27 = scalar_lea.vmem %s19_s19, 256  ;;  %p296_p4 = scmp.lt.s32.totalorder %s19_s19, %s19_s19 }
   0xa   :  { %p292_p3 = scmp.ne.s32.totalorder %s19_s19, %s291_s27  ;;  %p297_p5 = scmp.lt.s32.totalorder %s291_s27, %s291_s27 }
   0xc   :  { %p298_p6 = por %p297_p5, %p296_p4 }
   0xe   :  { %p299_p7 = pnand %p298_p6, %p292_p3 }
  0x10   :  { %302 = shalt.err (!%p299_p7)
}
  0x11   :  { %s354_s28 = smov 128   ;;  %s355_s29 = smov 8  }
  0x12   :  { %24 = dma.hbm_to_vmem [thread:$0]  %s457_s0, 256, %s19_s19, [#allocation5], %s354_s28, %s354_s28, %s355_s29  }
  0x13   :  { %s356_s7 = smov [#allocation7]   ;;  %s303_s11 = scalar_lea.hbm %s460_s3, 512 }
  0x14   :  { %s34_s8 = sshll.u32 %s356_s7, 4  ;;  %p304_p8 = scmp.ne.s32.totalorder %s460_s3, %s303_s11  ;;  %s35_s8 = int_to_ptr.vmem [resolvable:$true] %s34_s8 }
  0x15   :  { %p307_p9 = scmp.lt.u32.totalorder %s303_s11, %s460_s3 }
  0x17   :  { %p309_p10 = pnand %p307_p9, %p304_p8 }
  0x19   :  { %312 = shalt.err (!%p309_p10)
}
  0x1a   :  { %s313_s16 = scalar_lea.vmem %s35_s8, 512  ;;  %p318_p12 = scmp.lt.s32.totalorder %s35_s8, %s35_s8 }
  0x1b   :  { %p314_p11 = scmp.ne.s32.totalorder %s35_s8, %s313_s16  ;;  %p319_p13 = scmp.lt.s32.totalorder %s313_s16, %s313_s16 }
  0x1d   :  { %p320_p0 = por %p319_p13, %p318_p12 }
  0x1f   :  { %p321_p1 = pnand %p320_p0, %p314_p11 }
  0x21   :  { %324 = shalt.err (!%p321_p1)
}
  0x22   :  { %40 = dma.hbm_to_vmem [thread:$0]  %s460_s3, 512, %s35_s8, [#allocation8], %s354_s28, %s354_s28, %s355_s29  }
  0x23   :  { %347 = dma.done.wait [#allocation5], 256  }
  0x24   :  { %348 = vsyncadd [#allocation5], 4294967040 }
  0x25   :  { %349 = dma.done.wait [#allocation8], 512  }
  0x26   :  { %350 = vsyncadd [#allocation8], 4294966784  ;;  %vm59_vm0 = vcmask 261120   ;;  %v55_v0 = vld [vmem:[#allocation4] sm:$0xff]  ;;  %v56_v1 = vld [vmem:[#allocation4 + $0x8] sm:$0xff]  ;;  %v357_v20 = vmov 0.0  }
  0x27   :  { %v60_v2 = vsel %vm59_vm0, %v55_v0, 0.0  ;;  %v63_v3 = vsel %vm59_vm0, %v56_v1, 0.0  ;;  %v117_v14 = vld [vmem:[#allocation7] sm:$0xff]  ;;  %v118_v15 = vld [vmem:[#allocation7 + $0x8] sm:$0xff]  ;;  %v119_v17 = vld [vmem:[#allocation7 + $0x10] sm:$0xff]  ;;  %110 = vst.msk [vmem:[#allocation3 + $0x8] sm:$0xff] %vm59_vm0, %v357_v20 }
  0x28   :  { %61 = vadd.xlane.f32.xlu0 %v60_v2  ;;  %v263_v16 = vpack.c.bf16 %v118_v15, %v117_v14  ;;  %v120_v18 = vld [vmem:[#allocation7 + $0x18] sm:$0xff]  ;;  %109 = vst.msk [vmem:[#allocation3] sm:$0xff] %vm59_vm0, %v357_v20  ;;  %v241_v28 = vld [vmem:[%s458_s1] ss:$0 sm:$0xff]  ;;  %s358_s21 = smov [#allocation9]  }
  0x29   :  { %v267_v19 = vpack.c.bf16 %v120_v18, %v119_v17  ;;  %v242_v30 = vld [vmem:[%s459_s2] ss:$0 sm:$0xff]  ;;  %s228_s22 = sshll.u32 %s358_s21, 4  ;;  %s229_s22 = int_to_ptr.vmem [resolvable:$true] %s228_s22 }
  0x2a   :  { %264 = vmatprep.subr.bf16.mxu0 %v263_v16  ;;  %v245_v45 = vld [vmem:[%s461_s4] ss:$0 sm:$0xff]  ;;  %s325_s23 = scalar_lea.vmem %s229_s22, 256  ;;  %p330_p3 = scmp.lt.s32.totalorder %s229_s22, %s229_s22 }
  0x2b   :  { %266 = vmatpush3.bf16.msra.mxu0 %v263_v16  ;;  %p326_p2 = scmp.ne.s32.totalorder %s229_s22, %s325_s23  ;;  %p331_p4 = scmp.lt.s32.totalorder %s325_s23, %s325_s23 }
  0x2c   :  { %64 = vadd.xlane.f32.xlu0 %v63_v3  ;;  %268 = vmatprep.subr.bf16.mxu0 %v267_v19 }
  0x2d   :  { %p332_p5 = por %p331_p4, %p330_p3 }
  0x2e   :  { %v112_v39 = vld [vmem:[#allocation3 + $0x8] sm:$0xff] }
  0x2f   :  { %270 = vmatpush3.bf16.msra.mxu0 %v267_v19  ;;  %v111_v40 = vld [vmem:[#allocation3] sm:$0xff]  ;;  %p333_p6 = pnand %p332_p5, %p326_p2 }
  0xb5   :  { %v62_v4 = vpop.xlane.xlu0 %61 }
  0xb6   :  { %v67_v5 = vmul.f32 0.03125, %v62_v4 }
  0xb8   :  { %v69_v6 = vsub.f32 %v55_v0, %v67_v5 }
  0xb9   :  { %v65_v7 = vpop.xlane.xlu0 %64 }
  0xba   :  { %v68_v8 = vmul.f32 0.03125, %v65_v7  ;;  %v71_v9 = vmul.f32 %v69_v6, %v69_v6 }
  0xbc   :  { %v70_v10 = vsub.f32 %v56_v1, %v68_v8  ;;  %v73_v11 = vsel %vm59_vm0, %v71_v9, 0.0 }
  0xbd   :  { %74 = vadd.xlane.f32.xlu1 %v73_v11 }
  0xbe   :  { %v72_v12 = vmul.f32 %v70_v10, %v70_v10 }
  0xc0   :  { %v76_v13 = vsel %vm59_vm0, %v72_v12, 0.0 }
  0xc1   :  { %77 = vadd.xlane.f32.xlu1 %v76_v13 }
 0x14a   :  { %v75_v21 = vpop.xlane.xlu1 %74 }
 0x14b   :  { %v79_v22 = vmul.f32 0.03125, %v75_v21 }
 0x14d   :  { %v81_v23 = vadd.f32 1e-05, %v79_v22 }
 0x14e   :  { %v78_v24 = vpop.xlane.xlu1 %77 }
 0x14f   :  { %277 = vrsqrt.f32 %v81_v23  ;;  %v80_v25 = vmul.f32 0.03125, %v78_v24 }
 0x151   :  { %v82_v26 = vadd.f32 1e-05, %v80_v25 }
 0x153   :  { %279 = vrsqrt.f32 %v82_v26 }
 0x159   :  { %v278_v27 = vpop.eup %277 }
 0x15a   :  { %v85_v29 = vmul.f32 %v278_v27, %v69_v6 }
 0x15c   :  { %v93_v31 = vmul.f32 %v241_v28, %v85_v29 }
 0x15d   :  { %v280_v32 = vpop.eup %279 }
 0x15e   :  { %v101_v33 = vadd.f32 %v242_v30, %v93_v31  ;;  %v86_v34 = vmul.f32 %v280_v32, %v70_v10 }
 0x160   :  { %103 = vst.msk [vmem:[#allocation2] sm:$0xff] %vm59_vm0, %v101_v33  ;;  %v94_v35 = vmul.f32 %v241_v28, %v86_v34 }
 0x162   :  { %v102_v36 = vadd.f32 %v242_v30, %v94_v35 }
 0x164   :  { %104 = vst.msk [vmem:[#allocation2 + $0x8] sm:$0xff] %vm59_vm0, %v102_v36 }
 0x167   :  { %v115_v37 = vld [vmem:[#allocation2] sm:$0xff] }
 0x168   :  { %260 = vmatprep.mubr.msk.f32.mxu0 %vm59_vm0, %v115_v37 }
 0x16b   :  { %v116_v38 = vld [vmem:[#allocation2 + $0x8] sm:$0xff] }
 0x16c   :  { %261 = vmatmul.mubr.msk.f32.vlgmr.msra.gmra.mrb[0].mxu0 %vm59_vm0, %v116_v38 }
 0x23f   :  { %v262_v41 = vpop.f32.mrb[0].mxu0 }
 0x240   :  { %v204_v42 = vadd.f32 %v262_v41, %v112_v39  ;;  %v194_v43 = vpop.f32.mrb[1].mxu0 }
 0x241   :  { %v203_v44 = vadd.f32 %v194_v43, %v111_v40 }
 0x242   :  { %206 = vst.msk [vmem:[#allocation3 + $0x8] sm:$0xff] %vm59_vm0, %v204_v42 }
 0x243   :  { %205 = vst.msk [vmem:[#allocation3] sm:$0xff] %vm59_vm0, %v203_v44 }
 0x249   :  { %v211_v46 = vld [vmem:[#allocation3 + $0x8] sm:$0xff] }
 0x24a   :  { %v210_v47 = vld [vmem:[#allocation3] sm:$0xff]  ;;  %v220_v48 = vadd.f32 %v245_v45, %v211_v46 }
 0x24b   :  { %v219_v49 = vadd.f32 %v245_v45, %v210_v47 }
 0x24c   :  { %222 = vst.msk [vmem:[#allocation9 + $0x8] sm:$0xff] %vm59_vm0, %v220_v48 }
 0x24d   :  { %221 = vst.msk [vmem:[#allocation9] sm:$0xff] %vm59_vm0, %v219_v49 }
 0x24e   :  { %336 = shalt.err (!%p333_p6)
}
 0x24f   :  { %s337_s25 = scalar_lea.hbm %s462_s5, 256 }
 0x250   :  { %p338_p7 = scmp.ne.s32.totalorder %s462_s5, %s337_s25  ;;  %p341_p8 = scmp.lt.u32.totalorder %s337_s25, %s462_s5 }
 0x252   :  { %p343_p9 = pnand %p341_p8, %p338_p7 }
 0x254   :  { %346 = shalt.err (!%p343_p9)
}
 0x255   :  { %234 = dma.vmem_to_hbm [thread:$0]  %s229_s22, 256, %s462_s5, [#allocation6], %s354_s28, %s354_s28, %s355_s29  }
 0x256   :  { %351 = dma.done.wait [#allocation6], 256  }
 0x257   :  { %352 = vsyncadd [#allocation6], 4294967040 }
 0x258   :  { %238 = vsyncpa [#allocation5], 1 }
 0x259   :  { %239 = vsyncpa [#allocation8], 1 }
 0x25a   :  { %240 = vsyncpa [#allocation6], 1 }

</bundles_post_ra>
